<compile_context>
chip_gen: v7x
topology: tpu7x:2x2x1
jax: 0.10.0
libtpu: 0.0.40
codegen_flags: <defaults>
</compile_context>

<pallas_src>
import functools
import math

import jax
import jax.numpy as jnp
from jax.experimental import pallas as pl
from jax.experimental.pallas import tpu as pltpu


# ----------------------------- VMEM budgeting ------------------------------

def _vmem_limit_bytes():
    # Generation-aware scoped-VMEM limit (v5e/v6e: 128 MiB phys, v7x: 64 MiB).
    try:
        cap = int(pltpu.get_tpu_info().vmem_capacity_bytes)
        return int(min(cap * 3 // 4, 96 * 1024 * 1024))
    except Exception:
        return 32 * 1024 * 1024


_VMEM_LIMIT = _vmem_limit_bytes()


def _cparams(*dims):
    if dims:
        return pltpu.CompilerParams(dimension_semantics=dims,
                                    vmem_limit_bytes=_VMEM_LIMIT)
    return pltpu.CompilerParams(vmem_limit_bytes=_VMEM_LIMIT)


def _round_up(x, m):
    return ((x + m - 1) // m) * m


# --------------------------- tiled matmul kernel ----------------------------

_TM, _TN, _TK = 256, 256, 512


def _mm_kernel(x_ref, w_ref, b_ref, o_ref, acc_ref, *, relu):
    @pl.when(pl.program_id(2) == 0)
    def _init():
        acc_ref[...] = jnp.zeros_like(acc_ref)

    acc_ref[...] += jnp.dot(x_ref[...], w_ref[...],
                            preferred_element_type=jnp.float32)

    @pl.when(pl.program_id(2) == pl.num_programs(2) - 1)
    def _fin():
        r = acc_ref[...] + b_ref[...]
        if relu:
            r = jnp.maximum(r, 0.0)
        o_ref[...] = r.astype(o_ref.dtype)


def _mm_res_kernel(x_ref, w_ref, b_ref, res_ref, o_ref, acc_ref, *, relu):
    @pl.when(pl.program_id(2) == 0)
    def _init():
        acc_ref[...] = jnp.zeros_like(acc_ref)

    acc_ref[...] += jnp.dot(x_ref[...], w_ref[...],
                            preferred_element_type=jnp.float32)

    @pl.when(pl.program_id(2) == pl.num_programs(2) - 1)
    def _fin():
        r = acc_ref[...] + b_ref[...] + res_ref[...].astype(jnp.float32)
        if relu:
            r = jnp.maximum(r, 0.0)
        o_ref[...] = r.astype(o_ref.dtype)


@functools.partial(jax.jit, static_argnames=("relu",))
def matmul_bias_act(x, w, b, relu=False, residual=None):
    """(M,K)@(K,N)+b [+residual] [ReLU]; bf16 I/O, f32 accumulation, tiled."""
    M, K = x.shape
    N = w.shape[1]
    tm = min(_TM, _round_up(M, 8))
    tn = min(_TN, _round_up(N, 128))
    tk = min(_TK, _round_up(K, 128))
    Mp, Kp, Np = _round_up(M, tm), _round_up(K, tk), _round_up(N, tn)

    xp = jnp.pad(x.astype(jnp.bfloat16), ((0, Mp - M), (0, Kp - K)))
    wp = jnp.pad(w.astype(jnp.bfloat16), ((0, Kp - K), (0, Np - N)))
    bp = jnp.pad(b.astype(jnp.float32), (0, Np - N)).reshape(1, Np)

    in_specs = [
        pl.BlockSpec((tm, tk), lambda i, j, k: (i, k)),
        pl.BlockSpec((tk, tn), lambda i, j, k: (k, j)),
        pl.BlockSpec((1, tn), lambda i, j, k: (0, j)),
    ]
    args = [xp, wp, bp]
    if residual is None:
        kern = functools.partial(_mm_kernel, relu=relu)
    else:
        rp = jnp.pad(residual.astype(jnp.bfloat16), ((0, Mp - M), (0, Np - N)))
        in_specs.append(pl.BlockSpec((tm, tn), lambda i, j, k: (i, j)))
        args.append(rp)
        kern = functools.partial(_mm_res_kernel, relu=relu)

    out = pl.pallas_call(
        kern,
        out_shape=jax.ShapeDtypeStruct((Mp, Np), jnp.bfloat16),
        grid=(Mp // tm, Np // tn, Kp // tk),
        in_specs=in_specs,
        out_specs=pl.BlockSpec((tm, tn), lambda i, j, k: (i, j)),
        scratch_shapes=[pltpu.VMEM((tm, tn), jnp.float32)],
        compiler_params=_cparams("parallel", "parallel", "arbitrary"),
    )(*args)
    return out[:M, :N]


# ----------------------- conv wrappers around the matmul --------------------

def _extract_patches(x, kh, kw, stride, pad):
    """NHWC -> (N, oh, ow, kh, kw, C); pure-JAX glue (strided convs / stem only)."""
    if pad > 0:
        x = jnp.pad(x, ((0, 0), (pad, pad), (pad, pad), (0, 0)))
    N, H, W, C = x.shape
    oh = (H - kh) // stride + 1
    ow = (W - kw) // stride + 1
    rows = []
    for i in range(kh):
        cols = []
        for j in range(kw):
            cols.append(x[:, i:i + stride * (oh - 1) + 1:stride,
                          j:j + stride * (ow - 1) + 1:stride, :])
        rows.append(jnp.stack(cols, axis=3))
    return jnp.stack(rows, axis=3), oh, ow


@functools.partial(jax.jit, static_argnames=("kh", "kw", "stride", "pad", "relu"))
def conv_im2col(x, w, b, kh, kw, stride, pad, relu):
    """Dense conv via im2col + tiled matmul.  w: (kh*kw*C, O) pre-transposed."""
    # TODO(synk): strided 3x3 convs (3 of 16 blocks) and the 1-channel stem
    # still use im2col glue; stride-1 3x3 convs use the fused windowed kernel.
    N, _, _, C = x.shape
    O = w.shape[1]
    p, oh, ow = _extract_patches(x.astype(jnp.bfloat16), kh, kw, stride, pad)
    pm = p.reshape(N * oh * ow, kh * kw * C)
    out = matmul_bias_act(pm, w, b, relu=relu)
    return out.reshape(N, oh, ow, O)


@functools.partial(jax.jit, static_argnames=("relu", "stride"))
def conv1x1(x, w, b, relu=False, stride=1, residual=None):
    """1x1 conv (+BN folded) as a tiled matmul; optional fused residual+ReLU."""
    if stride > 1:
        x = x[:, ::stride, ::stride, :]
    N, H, W, C = x.shape
    O = w.shape[1]
    res = None if residual is None else residual.reshape(N * H * W, O)
    out = matmul_bias_act(x.reshape(N * H * W, C), w, b, relu=relu, residual=res)
    return out.reshape(N, H, W, O)


# ------------------ windowed 3x3 conv kernel (stride 1, pad 1) --------------

def _conv3x3_kernel(x_ref, w_ref, b_ref, o_ref, *, oh, ow, relu):
    # x_ref: (1, oh+2, ow+2, C), w_ref: (3, 3, C, TO), b_ref: (1, TO)
    C = x_ref.shape[3]
    TO = o_ref.shape[3]
    acc = jnp.zeros((oh * ow, TO), jnp.float32)
    for i in range(3):
        for j in range(3):
            win = x_ref[0, i:i + oh, j:j + ow, :]           # (oh, ow, C)
            acc = acc + jnp.dot(win.reshape(oh * ow, C), w_ref[i, j],
                                preferred_element_type=jnp.float32)
    r = acc + b_ref[...]
    if relu:
        r = jnp.maximum(r, 0.0)
    o_ref[0] = r.reshape(oh, ow, TO).astype(o_ref.dtype)


@functools.partial(jax.jit, static_argnames=("relu",))
def conv3x3_s1(x, w, b, relu=True):
    """3x3/stride1/pad1 dense conv (block-diagonal grouped weights).

    Per-image windowed kernel: 9 in-kernel tap matmuls, no im2col blowup,
    lane-dense output tiles along the out-channel grid axis."""
    N, H, W, C = x.shape
    O = w.shape[3]
    to = O if O <= 256 else 256
    xp = jnp.pad(x.astype(jnp.bfloat16), ((0, 0), (1, 1), (1, 1), (0, 0)))
    kern = functools.partial(_conv3x3_kernel, oh=H, ow=W, relu=relu)
    return pl.pallas_call(
        kern,
        out_shape=jax.ShapeDtypeStruct((N, H, W, O), jnp.bfloat16),
        grid=(N, O // to),
        in_specs=[
            pl.BlockSpec((1, H + 2, W + 2, C), lambda n, o: (n, 0, 0, 0)),
            pl.BlockSpec((3, 3, C, to), lambda n, o: (0, 0, 0, o)),
            pl.BlockSpec((1, to), lambda n, o: (0, o)),
        ],
        out_specs=pl.BlockSpec((1, H, W, to), lambda n, o: (n, 0, 0, o)),
        compiler_params=_cparams("parallel", "parallel"),
    )(xp, w.astype(jnp.bfloat16), b.astype(jnp.float32).reshape(1, O))


# --------------------------- max pool 3x3 / s2 / p1 -------------------------

def _maxpool_kernel(x_ref, o_ref, *, oh, ow):
    # x_ref: (4, oh+1, ow+1, C) -- the 4 stride-phases of one padded image.
    m = None
    for i in range(3):
        for j in range(3):
            ph = (i % 2) * 2 + (j % 2)
            win = x_ref[ph, i // 2:i // 2 + oh, j // 2:j // 2 + ow, :]
            m = win if m is None else jnp.maximum(m, win)
    o_ref[0] = m


@jax.jit
def maxpool3x3_s2(x):
    """3x3/stride2/pad1 max pool; in-kernel windowed max (no 9x stacking)."""
    N, H, W, C = x.shape
    oh = (H - 1) // 2 + 1
    ow = (W - 1) // 2 + 1
    hp, wp = 2 * oh + 2, 2 * ow + 2
    xp = jnp.pad(x, ((0, 0), (1, hp - H - 1), (1, wp - W - 1), (0, 0)),
                 constant_values=-jnp.inf)
    # split even/odd stride phases -> (N*4, oh+1, ow+1, C)
    ph = xp.reshape(N, oh + 1, 2, ow + 1, 2, C)
    ph = jnp.transpose(ph, (0, 2, 4, 1, 3, 5)).reshape(N * 4, oh + 1, ow + 1, C)
    kern = functools.partial(_maxpool_kernel, oh=oh, ow=ow)
    return pl.pallas_call(
        kern,
        out_shape=jax.ShapeDtypeStruct((N, oh, ow, C), x.dtype),
        grid=(N,),
        in_specs=[pl.BlockSpec((4, oh + 1, ow + 1, C), lambda n: (n, 0, 0, 0))],
        out_specs=pl.BlockSpec((1, oh, ow, C), lambda n: (n, 0, 0, 0)),
        compiler_params=_cparams("parallel"),
    )(ph)


# ----------------------- fused avgpool + FC head kernel ---------------------

def _head_kernel(x_ref, w1_ref, b1_ref, w2_ref, b2_ref, o_ref):
    feats = jnp.mean(x_ref[...].astype(jnp.float32), axis=1)        # (N, 2048)
    h = jnp.dot(feats.astype(jnp.bfloat16), w1_ref[...],
                preferred_element_type=jnp.float32) + b1_ref[...]
    o = jnp.dot(h, w2_ref[...], preferred_element_type=jnp.float32) + b2_ref[...]
    o_ref[...] = o


@jax.jit
def fc_head(x, w1, b1, w2p, b2p):
    """Adaptive avg-pool + Linear(2048,256) + Linear(256,3 padded to 128 lanes)."""
    N, H, W, C = x.shape
    xr = x.reshape(N, H * W, C).astype(jnp.bfloat16)
    return pl.pallas_call(
        _head_kernel,
        out_shape=jax.ShapeDtypeStruct((N, w2p.shape[1]), jnp.float32),
        compiler_params=_cparams(),
    )(xr, w1.astype(jnp.bfloat16), b1.astype(jnp.float32).reshape(1, -1),
      w2p.astype(jnp.float32), b2p.astype(jnp.float32).reshape(1, -1))


# ------------------------------- parameters ---------------------------------

GROUPS = 32
WIDTH_PER_GROUP = 4
EXPANSION = 4
LAYER_CFG = [(64, 3, 1), (128, 4, 2), (256, 6, 2), (512, 3, 2)]  # resnext50_32x4d


def _fold_bn(w, gamma, beta, mean, var, eps=1e-5):
    s = gamma / jnp.sqrt(var + eps)
    return w * s[:, None, None, None], beta - mean * s


def _make_conv_bn(keys, o, i, kh, kw):
    w = jax.random.normal(next(keys), (o, i, kh, kw), jnp.float32) / math.sqrt(i * kh * kw)
    gamma = 1.0 + 0.05 * jax.random.normal(next(keys), (o,), jnp.float32)
    beta = 0.05 * jax.random.normal(next(keys), (o,), jnp.float32)
    mean = 0.05 * jax.random.normal(next(keys), (o,), jnp.float32)
    var = 1.0 + 0.05 * jax.random.uniform(next(keys), (o,), jnp.float32)
    return _fold_bn(w, gamma, beta, mean, var)


def _to_mat(w_oihw):                       # (O, I, 1, 1) -> (I, O)
    return jnp.transpose(w_oihw[:, :, 0, 0], (1, 0))


def _grouped_to_dense(wg, groups):
    """(O, Ig, kh, kw) grouped weight -> block-diagonal dense (kh, kw, C, O)."""
    O, Ig, kh, kw = wg.shape
    Og = O // groups
    C = Ig * groups
    wt = jnp.transpose(wg, (2, 3, 1, 0))                       # (kh, kw, Ig, O)
    wt_full = wt[:, :, jnp.arange(C) % Ig, :]                  # (kh, kw, C, O)
    mask = (jnp.arange(C)[:, None] // Ig == jnp.arange(O)[None, :] // Og)
    return wt_full * mask[None, None, :, :].astype(wt.dtype)


def build_params(key):
    keys = iter(jax.random.split(key, 400))
    params = {}

    # conv_layer (1->64, 7x7, s2, p3, no bias) fused with backbone bn1.
    w, b = _make_conv_bn(keys, 64, 1, 7, 7)
    params["stem"] = (jnp.transpose(w, (2, 3, 1, 0)).reshape(49, 64).astype(jnp.bfloat16), b)

    blocks = []
    in_ch = 64
    for planes, nblocks, stride in LAYER_CFG:
        width = int(planes * WIDTH_PER_GROUP / 64) * GROUPS
        for bi in range(nblocks):
            s = stride if bi == 0 else 1
            w1, b1 = _make_conv_bn(keys, width, in_ch, 1, 1)
            w2, b2 = _make_conv_bn(keys, width, width // GROUPS, 3, 3)
            w3, b3 = _make_conv_bn(keys, planes * EXPANSION, width, 1, 1)
            w2d = _grouped_to_dense(w2, GROUPS)                # (3, 3, width, width)
            if s != 1:
                w2d = w2d.reshape(9 * width, width)            # im2col layout
            blk = {
                "conv1": (_to_mat(w1).astype(jnp.bfloat16), b1),
                "conv2": (w2d.astype(jnp.bfloat16), b2),
                "conv3": (_to_mat(w3).astype(jnp.bfloat16), b3),
                "stride": s,
                "downsample": None,
            }
            if s != 1 or in_ch != planes * EXPANSION:
                wd, bd = _make_conv_bn(keys, planes * EXPANSION, in_ch, 1, 1)
                blk["downsample"] = (_to_mat(wd).astype(jnp.bfloat16), bd)
            blocks.append(blk)
            in_ch = planes * EXPANSION
    params["blocks"] = blocks

    # FC head (weights pre-transposed; 3-wide output padded to 128 lanes).
    w1 = jax.random.normal(next(keys), (256, 2048), jnp.float32) / math.sqrt(2048)
    b1 = 0.05 * jax.random.normal(next(keys), (256,), jnp.float32)
    w2 = jax.random.normal(next(keys), (3, 256), jnp.float32) / math.sqrt(256)
    b2 = 0.05 * jax.random.normal(next(keys), (3,), jnp.float32)
    params["fc1w"] = jnp.transpose(w1).astype(jnp.bfloat16)            # (2048, 256)
    params["fc1b"] = b1
    params["fc2w"] = jnp.zeros((256, 128), jnp.float32).at[:, :3].set(jnp.transpose(w2))
    params["fc2b"] = jnp.zeros((128,), jnp.float32).at[:3].set(b2)
    return params


# --------------------------------- forward ----------------------------------

def bottleneck_forward(x, blk):
    w1, b1 = blk["conv1"]
    out = conv1x1(x, w1, b1, relu=True)
    w2, b2 = blk["conv2"]
    if blk["stride"] == 1:
        out = conv3x3_s1(out, w2, b2, relu=True)
    else:
        out = conv_im2col(out, w2, b2, kh=3, kw=3, stride=blk["stride"], pad=1,
                          relu=True)
    identity = x
    if blk["downsample"] is not None:
        wd, bd = blk["downsample"]
        identity = conv1x1(x, wd, bd, relu=False, stride=blk["stride"])
    w3, b3 = blk["conv3"]
    # conv3 + bn3, residual add and final ReLU fused in the matmul epilogue.
    return conv1x1(out, w3, b3, relu=True, residual=identity)


def resnext_forward(params, x_nchw):
    x = jnp.transpose(x_nchw, (0, 2, 3, 1)).astype(jnp.bfloat16)   # NCHW -> NHWC
    # conv_layer + bn1 + relu (BN folded, ReLU fused into the matmul epilogue)
    x = conv_im2col(x, params["stem"][0], params["stem"][1],
                    kh=7, kw=7, stride=2, pad=3, relu=True)
    x = maxpool3x3_s2(x)
    for blk in params["blocks"]:
        x = bottleneck_forward(x, blk)
    out = fc_head(x, params["fc1w"], params["fc1b"], params["fc2w"], params["fc2b"])
    # TODO(synk): nn.Dropout(p=0.5) is eval-mode identity here; training-mode
    # random masking (and BN batch-stat mode) is not reproduced.
    return out[:, :3]


if __name__ == "__main__":
    key = jax.random.PRNGKey(0)
    pkey, xkey = jax.random.split(key)
    params = build_params(pkey)
    x = jax.random.normal(xkey, (2, 1, 16, 16), jnp.float32)   # NCHW, 1 channel
    out = resnext_forward(params, x)
    out = jax.block_until_ready(out)
    assert out.shape == (2, 3), out.shape
    assert bool(jnp.all(jnp.isfinite(out)))
    print("KERNEL_OK")
</pallas_src>

<mosaic_0001>
module attributes {stable_mosaic.version = 11 : i64} {
  func.func @_mm_kernel(%arg0: i32, %arg1: i32, %arg2: i32, %arg3: memref<128x128xbf16, #tpu.memory_space<vmem>>, %arg4: memref<128x128xbf16, #tpu.memory_space<vmem>>, %arg5: memref<1x128xf32, #tpu.memory_space<vmem>>, %arg6: memref<128x128xbf16, #tpu.memory_space<vmem>>, %arg7: memref<128x128xf32, #tpu.memory_space<vmem>>) attributes {dimension_semantics = [#tpu.dimension_semantics<parallel>, #tpu.dimension_semantics<parallel>, #tpu.dimension_semantics<arbitrary>], iteration_bounds = array<i64: 1, 1, 1>, scalar_prefetch = 0 : i64, scratch_operands = 1 : i64, tpu.core_type = #tpu.core_type<tc>, window_params = [{transform_indices = @transform_0, window_bounds = array<i64: 128, 128>}, {transform_indices = @transform_1, window_bounds = array<i64: 128, 128>}, {transform_indices = @transform_2, window_bounds = array<i64: 1, 128>}, {transform_indices = @transform_3, window_bounds = array<i64: 128, 128>}]} {
    %c0_i32 = arith.constant 0 : i32
    %0 = arith.cmpi eq, %arg2, %c0_i32 : i32
    %1 = arith.extui %0 : i1 to i32
    %c0_i32_0 = arith.constant 0 : i32
    %2 = arith.cmpi ne, %1, %c0_i32_0 : i32
    scf.if %2 {
      %cst_10 = arith.constant 0.000000e+00 : f32
      %12 = vector.broadcast %cst_10 : f32 to vector<128x128xf32>
      %c0_11 = arith.constant 0 : index
      %c0_12 = arith.constant 0 : index
      %13 = vector.load %arg7[%c0_11, %c0_12] : memref<128x128xf32, #tpu.memory_space<vmem>>, vector<128x128xf32>
      tpu.vector_store %arg7[%c0_11, %c0_12], %12 {strides = array<i32>} : memref<128x128xf32, #tpu.memory_space<vmem>>, vector<128x128xf32>,
    } else {
    }
    %c0 = arith.constant 0 : index
    %c0_1 = arith.constant 0 : index
    %3 = vector.load %arg7[%c0, %c0_1] : memref<128x128xf32, #tpu.memory_space<vmem>>, vector<128x128xf32>
    %c0_2 = arith.constant 0 : index
    %c0_3 = arith.constant 0 : index
    %4 = vector.load %arg3[%c0_2, %c0_3] : memref<128x128xbf16, #tpu.memory_space<vmem>>, vector<128x128xbf16>
    %c0_4 = arith.constant 0 : index
    %c0_5 = arith.constant 0 : index
    %5 = vector.load %arg4[%c0_4, %c0_5] : memref<128x128xbf16, #tpu.memory_space<vmem>>, vector<128x128xbf16>
    %cst = arith.constant dense<0.000000e+00> : vector<128x128xf32>
    %6 = tpu.matmul %4, %5, %cst {dimension_numbers = #tpu.dot_dimension_numbers<[1], [0], [0], [1], [0, 0, 1, 1], [], []>} : vector<128x128xbf16>, vector<128x128xbf16>, vector<128x128xf32> -> vector<128x128xf32>
    %7 = arith.addf %3, %6 : vector<128x128xf32>
    %c0_6 = arith.constant 0 : index
    %c0_7 = arith.constant 0 : index
    %8 = vector.load %arg7[%c0_6, %c0_7] : memref<128x128xf32, #tpu.memory_space<vmem>>, vector<128x128xf32>
    tpu.vector_store %arg7[%c0_6, %c0_7], %7 {strides = array<i32>} : memref<128x128xf32, #tpu.memory_space<vmem>>, vector<128x128xf32>,
    %c0_i32_8 = arith.constant 0 : i32
    %9 = arith.cmpi eq, %arg2, %c0_i32_8 : i32
    %10 = arith.extui %9 : i1 to i32
    %c0_i32_9 = arith.constant 0 : i32
    %11 = arith.cmpi ne, %10, %c0_i32_9 : i32
    scf.if %11 {
      %c0_10 = arith.constant 0 : index
      %c0_11 = arith.constant 0 : index
      %12 = vector.load %arg7[%c0_10, %c0_11] : memref<128x128xf32, #tpu.memory_space<vmem>>, vector<128x128xf32>
      %c0_12 = arith.constant 0 : index
      %c0_13 = arith.constant 0 : index
      %13 = vector.load %arg5[%c0_12, %c0_13] : memref<1x128xf32, #tpu.memory_space<vmem>>, vector<1x128xf32>
      %14 = vector.broadcast %13 : vector<1x128xf32> to vector<128x128xf32>
      %15 = arith.addf %12, %14 : vector<128x128xf32>
      %cst_14 = arith.constant 0.000000e+00 : f32
      %16 = vector.broadcast %cst_14 : f32 to vector<128x128xf32>
      %17 = arith.maximumf %15, %16 : vector<128x128xf32>
      %18 = arith.truncf %17 : vector<128x128xf32> to vector<128x128xbf16>
      %c0_15 = arith.constant 0 : index
      %c0_16 = arith.constant 0 : index
      %19 = vector.load %arg6[%c0_15, %c0_16] : memref<128x128xbf16, #tpu.memory_space<vmem>>, vector<128x128xbf16>
      tpu.vector_store %arg6[%c0_15, %c0_16], %18 {strides = array<i32>} : memref<128x128xbf16, #tpu.memory_space<vmem>>, vector<128x128xbf16>,
    } else {
    }
    return
  }
  func.func @transform_0(%arg0: i32, %arg1: i32, %arg2: i32) -> (i32, i32) {
    %c0_i32 = arith.constant 0 : i32
    return %arg0, %arg2 : i32, i32
  }
  func.func @transform_1(%arg0: i32, %arg1: i32, %arg2: i32) -> (i32, i32) {
    %c0_i32 = arith.constant 0 : i32
    return %arg2, %arg1 : i32, i32
  }
  func.func @transform_2(%arg0: i32, %arg1: i32, %arg2: i32) -> (i32, i32) {
    %c0_i32 = arith.constant 0 : i32
    %c0_i32_0 = arith.constant 0 : i32
    return %c0_i32, %arg1 : i32, i32
  }
  func.func @transform_3(%arg0: i32, %arg1: i32, %arg2: i32) -> (i32, i32) {
    %c0_i32 = arith.constant 0 : i32
    return %arg0, %arg1 : i32, i32
  }
}

</mosaic_0001>

<bundles_post_ra>
// kernel: matmul_bias_act.1
= control target key start
LH: loop header
LB: loop body
LE: loop exit
PB: predicated region body
PF: predicated region fallthrough
CT: control target
= control target key end

     0   :  { %s721_s1 = inlined_call_operand.vmem [shape: bf16[128,128], index: 1, kind: input, shape index: {}]   ;;  %s722_s0 = inlined_call_operand.vmem [shape: bf16[128,128], index: 0, kind: input, shape index: {}]   ;;  %s723_s2 = inlined_call_operand.vmem [shape: f32[1,128], index: 2, kind: input, shape index: {}]   ;;  %s724_s3 = inlined_call_operand.vmem [shape: bf16[128,128], index: 3, kind: output, shape index: {}]  }
   0x1   :  { %v610_v0 = vld [vmem:[%s721_s1] sm:$0xff]   ;;  %v611_v1 = vld [vmem:[%s721_s1 + $0x8] sm:$0xff]   ;;  %v612_v2 = vld [vmem:[%s721_s1 + $0x10] sm:$0xff]  }
   0x2   :  { %562 = vmatprep.subr.bf16.mxu0 %v610_v0  ;;  %594 = vmatprep.subr.bf16.mxu1 %v610_v0  ;;  %v613_v3 = vld [vmem:[%s721_s1 + $0x18] sm:$0xff]   ;;  %v618_v4 = vld [vmem:[%s722_s0] sm:$0xff]   ;;  %v615_v7 = vld [vmem:[%s721_s1 + $0x28] sm:$0xff]  }
   0x3   :  { %563 = vmatpush3.bf16.msra.mxu0 %v610_v0  ;;  %602 = vmatpush3.bf16.msra.mxu1 %v610_v0  ;;  %v619_v5 = vld [vmem:[%s722_s0 + $0x20] sm:$0xff]   ;;  %v616_v8 = vld [vmem:[%s721_s1 + $0x30] sm:$0xff]   ;;  %v617_v9 = vld [vmem:[%s721_s1 + $0x38] sm:$0xff]  }
   0x4   :  { %564 = vmatprep.subr.bf16.mxu0 %v611_v1  ;;  %595 = vmatprep.subr.bf16.mxu1 %v611_v1  ;;  %v614_v6 = vld [vmem:[%s721_s1 + $0x20] sm:$0xff]   ;;  %v620_v10 = vld [vmem:[%s722_s0 + $0x8] sm:$0xff]   ;;  %v622_v12 = vld [vmem:[%s722_s0 + $0x10] sm:$0xff]  }
   0x5   :  { %578 = vmatprep.mubr.bf16.mxu0 %v618_v4  ;;  %586 = vmatprep.mubr.bf16.mxu1 %v619_v5  ;;  %v621_v11 = vld [vmem:[%s722_s0 + $0x28] sm:$0xff]   ;;  %v623_v13 = vld [vmem:[%s722_s0 + $0x30] sm:$0xff]   ;;  %v624_v14 = vld [vmem:[%s722_s0 + $0x18] sm:$0xff]  }
   0x6   :  { %v625_v15 = vld [vmem:[%s722_s0 + $0x38] sm:$0xff]   ;;  %v466_v16 = vld [vmem:[%s723_s2] ss:$0 sm:$0xff] }
   0x7   :  { %565 = vmatpush3.bf16.msra.mxu0 %v611_v1  ;;  %603 = vmatpush3.bf16.msra.mxu1 %v611_v1 }
   0x8   :  { %566 = vmatprep.subr.bf16.mxu0 %v612_v2  ;;  %596 = vmatprep.subr.bf16.mxu1 %v612_v2 }
   0xb   :  { %567 = vmatpush3.bf16.msra.mxu0 %v612_v2  ;;  %604 = vmatpush3.bf16.msra.mxu1 %v612_v2 }
   0xc   :  { %568 = vmatprep.subr.bf16.mxu0 %v613_v3  ;;  %597 = vmatprep.subr.bf16.mxu1 %v613_v3 }
   0xf   :  { %569 = vmatpush3.bf16.msra.mxu0 %v613_v3  ;;  %605 = vmatpush3.bf16.msra.mxu1 %v613_v3 }
  0x10   :  { %570 = vmatprep.subr.bf16.mxu0 %v614_v6  ;;  %598 = vmatprep.subr.bf16.mxu1 %v614_v6 }
  0x13   :  { %571 = vmatpush3.bf16.msra.mxu0 %v614_v6  ;;  %606 = vmatpush3.bf16.msra.mxu1 %v614_v6 }
  0x14   :  { %572 = vmatprep.subr.bf16.mxu0 %v615_v7  ;;  %599 = vmatprep.subr.bf16.mxu1 %v615_v7 }
  0x17   :  { %573 = vmatpush3.bf16.msra.mxu0 %v615_v7  ;;  %607 = vmatpush3.bf16.msra.mxu1 %v615_v7 }
  0x18   :  { %574 = vmatprep.subr.bf16.mxu0 %v616_v8  ;;  %600 = vmatprep.subr.bf16.mxu1 %v616_v8 }
  0x1b   :  { %575 = vmatpush3.bf16.msra.mxu0 %v616_v8  ;;  %608 = vmatpush3.bf16.msra.mxu1 %v616_v8 }
  0x1c   :  { %576 = vmatprep.subr.bf16.mxu0 %v617_v9  ;;  %601 = vmatprep.subr.bf16.mxu1 %v617_v9 }
  0x1f   :  { %577 = vmatpush3.bf16.msra.mxu0 %v617_v9  ;;  %609 = vmatpush3.bf16.msra.mxu1 %v617_v9 }
  0x22   :  { %579 = vmatmul.mubr.bf16.vlgmr.msra.gmra.mrb[0].mxu0 %v620_v10  ;;  %587 = vmatmul.mubr.bf16.vlgmr.msra.gmra.mrb[0].mxu1 %v621_v11 }
  0x23   :  { %582 = vmatprep.mubr.bf16.mxu0 %v622_v12  ;;  %590 = vmatprep.mubr.bf16.mxu1 %v623_v13 }
  0x2a   :  { %583 = vmatmul.mubr.bf16.gmra.mrb[4].mxu0 %v624_v14  ;;  %591 = vmatmul.mubr.bf16.gmra.mrb[4].mxu1 %v625_v15 }
  0xf5   :  { %v580_v17 = vpop.f32.mrb[0].mxu0  ;;  %v588_v18 = vpop.f32.mrb[0].mxu1 }
  0xf6   :  { %v336_v19 = vadd.f32 %v580_v17, %v466_v16  ;;  %v344_v20 = vadd.f32 %v588_v18, %v466_v16  ;;  %v213_v21 = vpop.f32.mrb[1].mxu0  ;;  %v245_v22 = vpop.f32.mrb[1].mxu1 }
  0xf7   :  { %v334_v23 = vadd.f32 %v466_v16, %v213_v21  ;;  %v342_v24 = vadd.f32 %v466_v16, %v245_v22  ;;  %v581_v25 = vpop.f32.mrb[2].mxu0  ;;  %v589_v26 = vpop.f32.mrb[2].mxu1 }
  0xf8   :  { %v337_v27 = vadd.f32 %v581_v25, %v466_v16  ;;  %v345_v28 = vadd.f32 %v589_v26, %v466_v16  ;;  %v216_v29 = vpop.f32.mrb[3].mxu0  ;;  %v248_v30 = vpop.f32.mrb[3].mxu1  ;;  %v352_v33 = vmax.f32 %v336_v19, 0.0  ;;  %v360_v34 = vmax.f32 %v344_v20, 0.0 }
  0xf9   :  { %v335_v31 = vadd.f32 %v466_v16, %v216_v29  ;;  %v343_v32 = vadd.f32 %v466_v16, %v248_v30  ;;  %v350_v37 = vmax.f32 %v334_v23, 0.0  ;;  %v358_v38 = vmax.f32 %v342_v24, 0.0 }
  0xfa   :  { %v353_v35 = vmax.f32 %v337_v27, 0.0  ;;  %v361_v36 = vmax.f32 %v345_v28, 0.0 }
  0xfb   :  { %v351_v39 = vmax.f32 %v335_v31, 0.0  ;;  %v359_v40 = vmax.f32 %v343_v32, 0.0 }
  0xfc   :  { %v507_v41 = vpack.c.bf16 %v353_v35, %v352_v33  ;;  %v527_v42 = vpack.c.bf16 %v361_v36, %v360_v34 }
  0xfd   :  { %v502_v43 = vpack.c.bf16 %v351_v39, %v350_v37  ;;  %v522_v44 = vpack.c.bf16 %v359_v40, %v358_v38  ;;  %v584_v45 = vpop.f32.mrb[4].mxu0  ;;  %v592_v46 = vpop.f32.mrb[4].mxu1 }
  0xfe   :  { %539 = vst [vmem:[%s724_s3 + $0x8] sm:$0xff] %v507_v41   ;;  %543 = vst [vmem:[%s724_s3 + $0x28] sm:$0xff] %v527_v42   ;;  %v340_v47 = vadd.f32 %v584_v45, %v466_v16  ;;  %v348_v48 = vadd.f32 %v592_v46, %v466_v16  ;;  %v229_v49 = vpop.f32.mrb[5].mxu0  ;;  %v261_v50 = vpop.f32.mrb[5].mxu1 }
  0xff   :  { %503 = vst [vmem:[%s724_s3] sm:$0xff] %v502_v43   ;;  %542 = vst [vmem:[%s724_s3 + $0x20] sm:$0xff] %v522_v44   ;;  %v338_v51 = vadd.f32 %v466_v16, %v229_v49  ;;  %v346_v52 = vadd.f32 %v466_v16, %v261_v50  ;;  %v585_v53 = vpop.f32.mrb[6].mxu0  ;;  %v593_v54 = vpop.f32.mrb[6].mxu1 }
 0x100   :  { %v341_v55 = vadd.f32 %v585_v53, %v466_v16  ;;  %v349_v56 = vadd.f32 %v593_v54, %v466_v16  ;;  %v232_v57 = vpop.f32.mrb[7].mxu0  ;;  %v264_v58 = vpop.f32.mrb[7].mxu1  ;;  %v356_v61 = vmax.f32 %v340_v47, 0.0  ;;  %v364_v62 = vmax.f32 %v348_v48, 0.0 }
 0x101   :  { %v339_v59 = vadd.f32 %v466_v16, %v232_v57  ;;  %v347_v60 = vadd.f32 %v466_v16, %v264_v58  ;;  %v354_v1 = vmax.f32 %v338_v51, 0.0  ;;  %v362_v2 = vmax.f32 %v346_v52, 0.0 }
 0x102   :  { %v357_v63 = vmax.f32 %v341_v55, 0.0  ;;  %v365_v0 = vmax.f32 %v349_v56, 0.0 }
 0x103   :  { %v355_v3 = vmax.f32 %v339_v59, 0.0  ;;  %v363_v4 = vmax.f32 %v347_v60, 0.0 }
 0x104   :  { %v517_v5 = vpack.c.bf16 %v357_v63, %v356_v61  ;;  %v537_v6 = vpack.c.bf16 %v365_v0, %v364_v62 }
 0x105   :  { %v512_v7 = vpack.c.bf16 %v355_v3, %v354_v1  ;;  %v532_v8 = vpack.c.bf16 %v363_v4, %v362_v2 }
 0x106   :  { %541 = vst [vmem:[%s724_s3 + $0x18] sm:$0xff] %v517_v5   ;;  %545 = vst [vmem:[%s724_s3 + $0x38] sm:$0xff] %v537_v6  }
 0x107   :  { %540 = vst [vmem:[%s724_s3 + $0x10] sm:$0xff] %v512_v7   ;;  %544 = vst [vmem:[%s724_s3 + $0x30] sm:$0xff] %v532_v8  }

</bundles_post_ra>
